<compile_context>
chip_gen: v6e
topology: v6e:2x2x1
jax: 0.10.0
libtpu: 0.0.40
codegen_flags: <defaults>
</compile_context>

<pallas_src>
import functools

import jax
import jax.numpy as jnp
from jax import lax
from jax.experimental import pallas as pl
from jax.experimental.pallas import tpu as pltpu


def _cdiv(a, b):
    return -(-a // b)


def _round_up(a, b):
    return _cdiv(a, b) * b


def downconv_kernel(x_ref, w_ref, b_ref, o_ref):
    """One (batch-tile, lane-chunk) grid step of the strided 1-channel conv.

    x_ref: (s, TN, TR) VMEM,  x_ref[b, n, r] = x_pad[n0 + n, (j0 + r) * s + b]
    w_ref: (K,) f32 SMEM conv taps;  b_ref: (1,) f32 SMEM bias
    o_ref: (TN, TO) f32 VMEM, lane-dense (TO % 128 == 0)
    """
    s, tn, _ = x_ref.shape
    K = w_ref.shape[0]
    TO = o_ref.shape[1]
    q = _cdiv(K, s)  # row-shift range of the taps

    # Accumulate in <=256-lane sub-chunks so the live f32 accumulator stays
    # <= 32 vregs (no spill -> no vst-slot pressure on v5e/v6e) while the DMA
    # tile (TO lanes) stays large.
    CH = 256 if TO % 256 == 0 else 128
    bias_tile = jnp.full((tn, CH), b_ref[0], jnp.float32)  # hoisted broadcast

    for c0 in range(0, TO, CH):  # static lane sub-chunks
        acc = bias_tile
        if K <= 32:
            # Small K: fully unrolled straight-line VPU FMAs, static lane offsets.
            # (Tap slices at offset a>0 are unaligned lane slices; Mosaic handles
            # them on the XLU, which is idle here — the kernel is DMA-bound.)
            for k in range(K):
                a, b = divmod(k, s)
                tap = x_ref[b, :, c0 + a:c0 + a + CH]
                acc = acc + w_ref[k] * tap.astype(jnp.float32)
        else:
            # Large K: static loop over the row shift a (lane offsets stay
            # static), fori_loop over the stride phase b (dynamic leading-dim
            # index + dynamic SMEM weight index).
            # TODO(synk): for pathological q = ceil(K/stride) in the hundreds,
            # make the a-loop dynamic too (dynamic pl.ds lane starts).
            for a in range(q):
                nb = min(s, K - a * s)

                def tap_body(b, acc, _a=a, _c0=c0):
                    tap = x_ref[b, :, pl.ds(_c0 + _a, CH)]
                    return acc + w_ref[_a * s + b] * tap.astype(jnp.float32)

                acc = lax.fori_loop(0, nb, tap_body, acc, unroll=min(nb, 8))
        o_ref[:, c0:c0 + CH] = acc.astype(o_ref.dtype)


def _select_tiles(N, O, s, K, itemsize, max_lane_chunk):
    """Pick (TN, N_final, TO, n_chunks, HP, O_pad, q) under a ~24 MiB
    double-buffered VMEM budget, preferring lane chunks >= 512 and >= 2
    grid steps (v7x megacore)."""
    q = _cdiv(K, s)
    N16 = _round_up(max(N, 1), 16)      # sublane-pack safe for bf16 transfers
    TN = min(128, N16)
    O_pad128 = _round_up(O, 128)

    budget = 6 * 1024 * 1024            # per-step (input + output) block bytes

    def lane_cap(tn):
        per_lane = tn * (s * itemsize + 4)   # s input cols + one f32 out col
        return max((budget // per_lane) // 128 * 128, 0)

    cap = lane_cap(TN)
    while cap < 128 and TN > 16:
        TN -= 16
        cap = lane_cap(TN)
    if cap < 128:
        cap = 128  # TODO(synk): extreme stride; single 128-lane chunk may exceed budget.

    TO = max(128, min(O_pad128, cap, max_lane_chunk) // 128 * 128)
    n_chunks = _cdiv(O_pad128, TO)

    # Chunks whose taps reach into the next chunk (q > 1) get a q-1 row halo
    # duplicated into their window by the wrapper.
    HP = (q - 1) if (n_chunks > 1 and q > 1) else 0
    if n_chunks > 1 and HP > TO // 2:
        # Halo duplication would dominate HBM traffic; fall back to one chunk.
        # TODO(synk): proper overlapped-window path for huge K *and* huge O.
        n_chunks, TO, HP = 1, O_pad128, 0

    N_final = _round_up(N16, TN)
    # v7x megacore: expose >= 2 "parallel" grid steps when possible.
    if (N_final // TN) * n_chunks == 1:
        if N16 >= 32:
            TN = _round_up(_cdiv(N16, 2), 16)
            N_final = _round_up(N16, TN)
        elif TO >= 256:
            TO = _round_up(_cdiv(TO, 2), 128)
            n_chunks = _cdiv(O_pad128, TO)
            HP = (q - 1) if (n_chunks > 1 and q > 1) else 0

    return TN, N_final, TO, n_chunks, HP, n_chunks * TO, q


def down_conv(x, weight, bias, stride, compute_dtype=jnp.bfloat16,
              max_lane_chunk=4096):
    """x: (N, 1, L) -> (N, 1, O) float32, matching nn.Conv1d(1, 1, K, stride).

    compute_dtype: dtype of the x tile shipped HBM->VMEM (default bf16 halves
    the dominant HBM stream on every generation; the kernel upcasts to f32
    before the FMAs, so accumulation is always f32).
    """
    N, C, L = x.shape
    assert C == 1
    K = int(weight.shape[-1])
    s = int(stride)
    O = (L - K) // s + 1
    assert O >= 1
    itemsize = jnp.dtype(compute_dtype).itemsize

    TN, N_final, TO, n_chunks, HP, O_pad, q = _select_tiles(
        N, O, s, K, itemsize, max_lane_chunk)

    # Rows of the stride-decimated view (one "row" = s consecutive samples).
    if n_chunks == 1:
        TR = n_rows = max(O_pad + q - 1, _cdiv(L, s))
    else:
        TR = TO + HP
        n_rows = max(O_pad + HP, _cdiv(L, s))
    L_pad = n_rows * s

    # Layout plumbing (left to XLA; allow_input_fusion lets it fold into the
    # pallas_call input DMA): pad, fold the stride into its own axis and move
    # it to the front so every conv tap is a contiguous lane slice, then cut
    # the row axis into per-chunk windows (with a q-1 row halo when q > 1).
    x2 = x.reshape(N, L).astype(compute_dtype)
    x2 = jnp.pad(x2, ((0, N_final - N), (0, L_pad - L)))
    x3 = jnp.transpose(x2.reshape(N_final, n_rows, s), (2, 0, 1))  # (s, Nf, rows)
    if n_chunks == 1:
        x3c = x3.reshape(s, 1, N_final, TR)
    else:
        x3c = jnp.stack([x3[:, :, j * TO:j * TO + TR] for j in range(n_chunks)],
                        axis=1)                                     # (s, nc, Nf, TR)

    w = weight.reshape(K).astype(jnp.float32)
    bvec = bias.reshape(1).astype(jnp.float32)

    grid = (N_final // TN, n_chunks)
    cost = pl.CostEstimate(
        flops=2 * K * N * O,
        transcendentals=0,
        bytes_accessed=int(x3c.size) * itemsize + N_final * O_pad * 4 + (K + 1) * 4)

    out = pl.pallas_call(
        downconv_kernel,
        out_shape=jax.ShapeDtypeStruct((N_final, O_pad), jnp.float32),
        grid=grid,
        in_specs=[
            pl.BlockSpec((s, None, TN, TR), lambda i, j: (0, j, i, 0)),  # x tile
            pl.BlockSpec(memory_space=pltpu.MemorySpace.SMEM),           # weight
            pl.BlockSpec(memory_space=pltpu.MemorySpace.SMEM),           # bias
        ],
        out_specs=pl.BlockSpec((TN, TO), lambda i, j: (i, j)),
        compiler_params=pltpu.CompilerParams(
            dimension_semantics=("parallel", "parallel"),
            vmem_limit_bytes=32 * 1024 * 1024,
            allow_input_fusion=[True, False, False],
        ),
        cost_estimate=cost,
    )(x3c, w, bvec)

    if N_final == N and O_pad == O:
        return out.reshape(N, 1, O)       # aligned: skip the trailing slice pass
    return out[:N, :O].reshape(N, 1, O)


def make_downconv_params(input_size, output_size, key):
    """Deterministic Conv1d(1,1,K,stride) parameters (PyTorch-style uniform init)."""
    stride = input_size // output_size
    kernel_size = input_size - (output_size - 1) * stride
    kw, kb = jax.random.split(key)
    bound = 1.0 / jnp.sqrt(jnp.float32(kernel_size))   # fan_in = 1 * K
    weight = jax.random.uniform(kw, (1, 1, kernel_size), jnp.float32, -bound, bound)
    bias = jax.random.uniform(kb, (1,), jnp.float32, -bound, bound)
    return weight, bias, stride, kernel_size


def down_conv_ref(x, weight, bias, stride):
    """Pure-JAX reference matching nn.Conv1d(1,1,K,stride)."""
    out = lax.conv_general_dilated(
        x, weight, window_strides=(stride,), padding="VALID",
        dimension_numbers=("NCH", "OIH", "NCH"),
        precision=lax.Precision.HIGHEST)
    return out + bias.reshape(1, 1, 1)


if __name__ == "__main__":
    key = jax.random.PRNGKey(0)

    # (batch, input_size, output_size, max_lane_chunk)
    cases = [
        (2,   16,   8,   4096),  # K == stride (q = 1), single tile
        (130, 18,   8,   4096),  # K > stride  (q = 2), multiple batch tiles
        (4,   1027, 512, 256),   # output-lane chunking with a q-1 row halo
        (16,  1000, 8,   4096),  # large K (125) -> fori_loop tap path
    ]

    for batch, input_size, output_size, max_chunk in cases:
        key, kx, kp = jax.random.split(key, 3)
        x = jax.random.normal(kx, (batch, 1, input_size), jnp.float32)
        weight, bias, stride, kernel_size = make_downconv_params(
            input_size, output_size, kp)

        # bf16 transfer (default): compare against the reference on the
        # bf16-rounded input (kernel accumulates in f32 either way).
        run_bf16 = jax.jit(functools.partial(
            down_conv, stride=stride, compute_dtype=jnp.bfloat16,
            max_lane_chunk=max_chunk))
        out = jax.block_until_ready(run_bf16(x, weight, bias))
        assert out.shape == (batch, 1, output_size), out.shape
        x_bf = x.astype(jnp.bfloat16).astype(jnp.float32)
        ref_bf = down_conv_ref(x_bf, weight, bias, stride)
        assert jnp.allclose(out, ref_bf, atol=2e-3, rtol=2e-3), (
            batch, input_size, output_size,
            float(jnp.max(jnp.abs(out - ref_bf))))

        # f32 transfer: matches the exact reference tightly.
        run_f32 = jax.jit(functools.partial(
            down_conv, stride=stride, compute_dtype=jnp.float32,
            max_lane_chunk=max_chunk))
        out32 = jax.block_until_ready(run_f32(x, weight, bias))
        ref = down_conv_ref(x, weight, bias, stride)
        assert jnp.allclose(out32, ref, atol=1e-4, rtol=1e-4), (
            batch, input_size, output_size,
            float(jnp.max(jnp.abs(out32 - ref))))

    print("KERNEL_OK")
</pallas_src>

<mosaic_0001>
module attributes {stable_mosaic.version = 11 : i64} {
  func.func @downconv_kernel(%arg0: i32, %arg1: i32, %arg2: memref<2x1x16x128xbf16, #tpu.memory_space<vmem>>, %arg3: memref<2xf32, #tpu.memory_space<smem>>, %arg4: memref<1xf32, #tpu.memory_space<smem>>, %arg5: memref<16x128xf32, #tpu.memory_space<vmem>>) attributes {dimension_semantics = [#tpu.dimension_semantics<parallel>, #tpu.dimension_semantics<parallel>], iteration_bounds = array<i64: 1, 1>, scalar_prefetch = 0 : i64, scratch_operands = 0 : i64, tpu.core_type = #tpu.core_type<tc>, window_params = [{transform_indices = @transform_0, window_bounds = array<i64: 2, 1, 16, 128>}, {transform_indices = @transform_1, window_bounds = array<i64: 2>}, {transform_indices = @transform_2, window_bounds = array<i64: 1>}, {transform_indices = @transform_3, window_bounds = array<i64: 16, 128>}]} {
    %c0 = arith.constant 0 : index
    %0 = memref.load %arg4[%c0] : memref<1xf32, #tpu.memory_space<smem>>
    %1 = vector.broadcast %0 : f32 to vector<16x128xf32>
    %c0_0 = arith.constant 0 : index
    %c0_1 = arith.constant 0 : index
    %c0_2 = arith.constant 0 : index
    %c0_3 = arith.constant 0 : index
    %2 = vector.load %arg2[%c0_0, %c0_1, %c0_2, %c0_3] : memref<2x1x16x128xbf16, #tpu.memory_space<vmem>>, vector<1x1x16x128xbf16>
    %3 = vector.shape_cast %2 : vector<1x1x16x128xbf16> to vector<16x128xbf16>
    %c0_4 = arith.constant 0 : index
    %4 = memref.load %arg3[%c0_4] : memref<2xf32, #tpu.memory_space<smem>>
    %5 = arith.extf %3 : vector<16x128xbf16> to vector<16x128xf32>
    %6 = vector.broadcast %4 : f32 to vector<16x128xf32>
    %7 = arith.mulf %6, %5 : vector<16x128xf32>
    %8 = arith.addf %1, %7 : vector<16x128xf32>
    %c1 = arith.constant 1 : index
    %c0_5 = arith.constant 0 : index
    %c0_6 = arith.constant 0 : index
    %c0_7 = arith.constant 0 : index
    %9 = vector.load %arg2[%c1, %c0_5, %c0_6, %c0_7] : memref<2x1x16x128xbf16, #tpu.memory_space<vmem>>, vector<1x1x16x128xbf16>
    %10 = vector.shape_cast %9 : vector<1x1x16x128xbf16> to vector<16x128xbf16>
    %c1_8 = arith.constant 1 : index
    %11 = memref.load %arg3[%c1_8] : memref<2xf32, #tpu.memory_space<smem>>
    %12 = arith.extf %10 : vector<16x128xbf16> to vector<16x128xf32>
    %13 = vector.broadcast %11 : f32 to vector<16x128xf32>
    %14 = arith.mulf %13, %12 : vector<16x128xf32>
    %15 = arith.addf %8, %14 : vector<16x128xf32>
    %c0_9 = arith.constant 0 : index
    %c0_10 = arith.constant 0 : index
    %16 = vector.load %arg5[%c0_9, %c0_10] : memref<16x128xf32, #tpu.memory_space<vmem>>, vector<16x128xf32>
    tpu.vector_store %arg5[%c0_9, %c0_10], %15 {strides = array<i32>} : memref<16x128xf32, #tpu.memory_space<vmem>>, vector<16x128xf32>,
    return
  }
  func.func @transform_0(%arg0: i32, %arg1: i32) -> (i32, i32, i32, i32) {
    %c0_i32 = arith.constant 0 : i32
    %c0_i32_0 = arith.constant 0 : i32
    %c0_i32_1 = arith.constant 0 : i32
    return %c0_i32, %arg1, %arg0, %c0_i32_0 : i32, i32, i32, i32
  }
  func.func @transform_1(%arg0: i32, %arg1: i32) -> i32 {
    %c0_i32 = arith.constant 0 : i32
    %c0_i32_0 = arith.constant 0 : i32
    return %c0_i32 : i32
  }
  func.func @transform_2(%arg0: i32, %arg1: i32) -> i32 {
    %c0_i32 = arith.constant 0 : i32
    %c0_i32_0 = arith.constant 0 : i32
    return %c0_i32 : i32
  }
  func.func @transform_3(%arg0: i32, %arg1: i32) -> (i32, i32) {
    %c0_i32 = arith.constant 0 : i32
    return %arg0, %arg1 : i32, i32
  }
}

</mosaic_0001>

<bundles_post_ra>
// kernel: down_conv.2
= control target key start
LH: loop header
LB: loop body
LE: loop exit
PB: predicated region body
PF: predicated region fallthrough
CT: control target
= control target key end

     0   :  { %9 = vsyncpa [#allocation4], 0  ;;  %s165_s0 = inlined_call_operand.vmem [shape: f32[2], index: 0, kind: input, shape index: {}]   ;;  %s166_s1 = inlined_call_operand.<no memory space> [shape: f32[1], index: 1, kind: input, shape index: {}]   ;;  %s167_s2 = inlined_call_operand.vmem [shape: bf16[16,128,2], index: 2, kind: input, shape index: {}]   ;;  %s168_s3 = inlined_call_operand.vmem [shape: f32[16,128], index: 3, kind: output, shape index: {}]  }
   0x1   :  { %s18_s14 = sshll.u32 %s165_s0, 4  ;;  %s19_s14 = int_to_ptr.vmem [resolvable:$true] %s18_s14 }
   0x2   :  { %s112_s15 = scalar_lea.vmem %s19_s14, 16  ;;  %p117_p1 = scmp.lt.s32.totalorder %s19_s14, %s19_s14 }
   0x3   :  { %p113_p0 = scmp.ne.s32.totalorder %s19_s14, %s112_s15  ;;  %p118_p2 = scmp.lt.s32.totalorder %s112_s15, %s112_s15 }
   0x5   :  { %p119_p3 = por %p118_p2, %p117_p1 }
   0x7   :  { %p120_p4 = pnand %p119_p3, %p113_p0 }
   0x9   :  { %123 = shalt.err (!%p120_p4)
}
   0xa   :  { %s126_s16 = smov [#allocation3]  }
   0xb   :  { %21 = dma.vmem_to_smem %s19_s14, 16, %s126_s16, [#allocation4]  }
   0xc   :  { %124 = dma.done.wait [#allocation4], 16  }
   0xd   :  { %125 = vsyncadd [#allocation4], 4294967280 }
   0xe   :  { %27 = sfence }
   0xf   :  { %v28_v0 = vld [vmem:[%s167_s2] sm:$0xff]   ;;  %v111_v1 = vld [vmem:[%s167_s2 + $0x8] sm:$0xff]   ;;  %s66_s20 = sld [smem:[#allocation3]]  ;;  %v63_v9 = vstv %s166_s1 }
  0x10   :  { %34 = vst [vmem:[#allocation5] sm:$0xff] %v28_v0   ;;  %s95_s21 = sld [smem:[#allocation3 + $0x1]]  ;;  %v107_v2 = vunpack.c.l.bf16 %v111_v1  ;;  %v108_v3 = vunpack.c.h.bf16 %v111_v1 }
  0x15   :  { %v69_v5 = vstv %s66_s20 }
  0x16   :  { %v80_v6 = vstv %s95_s21 }
  0x17   :  { %v102_v4 = vld [vmem:[#allocation5] sm:$0xff]   ;;  %v81_v12 = vmul.f32 %v107_v2, %v80_v6  ;;  %v82_v13 = vmul.f32 %v108_v3, %v80_v6 }
  0x18   :  { %v103_v7 = vunpack.c.l.bf16 %v102_v4  ;;  %v104_v8 = vunpack.c.h.bf16 %v102_v4 }
  0x1a   :  { %v70_v10 = vmul.f32 %v103_v7, %v69_v5  ;;  %v71_v11 = vmul.f32 %v104_v8, %v69_v5 }
  0x1c   :  { %v72_v14 = vadd.f32 %v70_v10, %v63_v9  ;;  %v73_v15 = vadd.f32 %v71_v11, %v63_v9 }
  0x1e   :  { %v83_v16 = vadd.f32 %v81_v12, %v72_v14  ;;  %v84_v17 = vadd.f32 %v82_v13, %v73_v15 }
  0x20   :  { %85 = vst [vmem:[%s168_s3] sm:$0xff] %v83_v16  ;;  %86 = vst [vmem:[%s168_s3 + $0x8] sm:$0xff] %v84_v17 }
  0x21   :  { %91 = vsyncpa [#allocation4], 1 }

</bundles_post_ra>
